<compile_context>
chip_gen: v7x
topology: tpu7x:2x2x1
jax: 0.10.0
libtpu: 0.0.40
codegen_flags: <defaults>
</compile_context>

<pallas_src>
import functools

import jax
import jax.numpy as jnp
from jax.experimental import pallas as pl
from jax.experimental.pallas import tpu as pltpu


def _soft_target_loss_kernel(x_ref, t_ref, o_ref, *,
                             total_rows, row_tile, tiles_per_shard):
    j = pl.program_id(0)   # shard axis (parallel / core-parallel)
    k = pl.program_id(1)   # row-tile reduction axis (arbitrary)

    @pl.when(k == 0)
    def _():
        o_ref[...] = jnp.zeros_like(o_ref)

    x = x_ref[...].astype(jnp.float32)
    t = t_ref[...].astype(jnp.float32)

    # Numerically stable log-softmax pieces along the lane (class) axis.
    m = jnp.max(x, axis=-1, keepdims=True)
    shifted = x - m
    lse = jnp.log(jnp.sum(jnp.exp(shifted), axis=-1, keepdims=True))

    # Per-row loss:  sum_c(-t * (shifted - lse)) = lse * sum_c(t) - sum_c(t*shifted).
    t_sum = jnp.sum(t, axis=-1, keepdims=True)
    ts_sum = jnp.sum(t * shifted, axis=-1, keepdims=True)
    loss_rows = lse * t_sum - ts_sum                     # (row_tile, 1) f32

    tile_idx = j * tiles_per_shard + k
    row_start = tile_idx * row_tile
    full_tile = row_start + row_tile <= total_rows

    @pl.when(full_tile)
    def _():
        # Fast path for interior tiles: no mask, no iota.
        o_ref[...] += loss_rows

    @pl.when(jnp.logical_not(full_tile))
    def _():
        # Ragged last tile and clamped/duplicated overhang tiles of the last
        # shard.  Garbage or repeated rows may produce Inf/NaN per-row losses,
        # but the select is NaN-safe, so nothing leaks into the accumulator.
        local = jax.lax.broadcasted_iota(jnp.int32, (row_tile, 1), 0)
        valid = (row_start + local) < total_rows
        o_ref[...] += jnp.where(valid, loss_rows, 0.0)


def _chip_info():
    """(is_v7x, vmem_capacity_bytes) with conservative fallbacks."""
    kind = ""
    try:
        kind = jax.devices()[0].device_kind.lower()
    except Exception:
        pass
    is_v7 = ("v7" in kind) or ("7x" in kind)
    vmem_cap = 64 * 1024 * 1024 if is_v7 else 128 * 1024 * 1024
    try:
        vmem_cap = min(vmem_cap, int(pltpu.get_tpu_info().vmem_capacity_bytes))
    except Exception:
        pass
    return is_v7, vmem_cap


def _vmem_plan(rows, num_classes, x_itemsize, t_itemsize, is_v7, vmem_cap,
               row_tile):
    """Pick row_tile (if not given) and an explicit vmem_limit_bytes."""
    # VMEM bytes per tile-row:
    #   * double-buffered input tiles (x + target), native dtypes
    #   * ~5 full-tile f32 temporaries (casts, shifted, exp, t*shifted) -- generous
    per_row = num_classes * ((x_itemsize + t_itemsize) * 2 + 5 * 4)
    budget = (40 if is_v7 else 64) * 1024 * 1024
    budget = min(budget, (vmem_cap * 3) // 4)

    if row_tile is None:
        # v7x: ~3.2 TB/s HBM -> bigger tiles keep the ~0.35us/step overhead <5%.
        cap = 2048 if is_v7 else 1024
        max_rows = max(8, budget // per_row)
        row_tile = min(cap, (max_rows // 8) * 8)
        row_tile = min(row_tile, ((rows + 7) // 8) * 8)
        row_tile = max(8, row_tile)

    # Output column accumulator is (8,128)-tile padded + double-buffered.
    footprint = row_tile * per_row + row_tile * 128 * 4 * 2 + (2 << 20)
    vmem_limit = min(vmem_cap - (12 << 20), footprint + (4 << 20))
    vmem_limit = max(vmem_limit, 16 << 20)
    return int(row_tile), int(vmem_limit)


def soft_target_loss(x, target, *, row_tile=None, num_shards=None):
    """Pallas implementation of SoftTargetLoss.forward(x, target)."""
    assert x.shape == target.shape
    num_classes = x.shape[-1]
    x2 = x.reshape(-1, num_classes)
    t2 = target.reshape(-1, num_classes)
    rows = x2.shape[0]

    is_v7, vmem_cap = _chip_info()
    row_tile, vmem_limit = _vmem_plan(
        rows, num_classes, x2.dtype.itemsize, t2.dtype.itemsize,
        is_v7, vmem_cap, row_tile)

    total_tiles = max(1, (rows + row_tile - 1) // row_tile)
    if num_shards is None:
        # Shard axis is pure serial overhead on single-TC chips (v5e/v6e).
        num_shards = 2 if (is_v7 and total_tiles >= 2) else 1
    num_shards = max(1, min(num_shards, total_tiles))
    tiles_per_shard = (total_tiles + num_shards - 1) // num_shards

    def in_map(j, k):
        t_idx = j * tiles_per_shard + k
        # Clamp overhanging tiles of the last shard to a valid block; their
        # contribution is zeroed by the in-kernel row mask.
        return (jnp.minimum(t_idx, total_tiles - 1), 0)

    kernel = functools.partial(
        _soft_target_loss_kernel,
        total_rows=rows,
        row_tile=row_tile,
        tiles_per_shard=tiles_per_shard,
    )

    if is_v7 and num_shards > 1:
        # TODO(synk): verify on v7x hardware that CORE_PARALLEL actually splits
        # the shard axis across both TensorCores (plain "parallel" measured as
        # a codegen no-op on the other chips).
        dim_sems = (getattr(pltpu, "CORE_PARALLEL", "parallel"),
                    getattr(pltpu, "ARBITRARY", "arbitrary"))
    else:
        dim_sems = ("parallel", "arbitrary")

    partials = pl.pallas_call(
        kernel,
        out_shape=jax.ShapeDtypeStruct((num_shards * row_tile, 1), jnp.float32),
        grid_spec=pltpu.PrefetchScalarGridSpec(
            num_scalar_prefetch=0,
            grid=(num_shards, tiles_per_shard),
            in_specs=[
                pl.BlockSpec((row_tile, num_classes), in_map),
                pl.BlockSpec((row_tile, num_classes), in_map),
            ],
            # Constant in k -> resident accumulator across the reduction axis.
            out_specs=pl.BlockSpec((row_tile, 1), lambda j, k: (j, 0)),
        ),
        compiler_params=pltpu.CompilerParams(
            dimension_semantics=dim_sems,
            vmem_limit_bytes=vmem_limit,
        ),
    )(x2, t2)

    # Final cross-row / cross-shard reduce + mean in XLA (tiny).
    return jnp.sum(partials) / float(rows)


def _reference(x, target):
    return jnp.mean(jnp.sum(-target * jax.nn.log_softmax(x, axis=-1), axis=-1))


if __name__ == "__main__":
    key = jax.random.PRNGKey(0)
    k1, k2, k3, k4, k5, k6, k7, k8 = jax.random.split(key, 8)

    # Test 1: simple 2-D batch (8 rows, 32 classes), auto tile sizing.
    x = jax.random.normal(k1, (8, 32), dtype=jnp.float32)
    target = jax.nn.softmax(jax.random.normal(k2, (8, 32), dtype=jnp.float32), axis=-1)
    loss = soft_target_loss(x, target)
    jax.block_until_ready(loss)
    assert jnp.allclose(loss, _reference(x, target), rtol=1e-5, atol=1e-5), (
        loss, _reference(x, target))

    # Test 2: 3-D input with ragged row count (10 rows), forced small tile
    # -> exercises the in-kernel masked tail path.
    x3 = jax.random.normal(k3, (2, 5, 32), dtype=jnp.float32)
    t3 = jax.nn.softmax(jax.random.normal(k4, (2, 5, 32), dtype=jnp.float32), axis=-1)
    loss3 = soft_target_loss(x3, t3, row_tile=8)
    jax.block_until_ready(loss3)
    assert jnp.allclose(loss3, _reference(x3, t3), rtol=1e-5, atol=1e-5), (
        loss3, _reference(x3, t3))

    # Test 3: 40 rows, tile=8, forced 2 shards -> 5 tiles over 2 shards
    # (uneven split exercises the clamped overhang tile of the last shard).
    x4 = jax.random.normal(k5, (40, 32), dtype=jnp.float32)
    t4 = jax.nn.softmax(jax.random.normal(k6, (40, 32), dtype=jnp.float32), axis=-1)
    loss4 = soft_target_loss(x4, t4, row_tile=8, num_shards=2)
    jax.block_until_ready(loss4)
    assert jnp.allclose(loss4, _reference(x4, t4), rtol=1e-5, atol=1e-5), (
        loss4, _reference(x4, t4))

    # Test 4: mixed dtypes (bf16 logits, f32 soft targets) -> exercises the
    # sum-of-itemsizes VMEM budget and in-kernel f32 cast.
    x5 = jax.random.normal(k7, (16, 32), dtype=jnp.bfloat16)
    t5 = jax.nn.softmax(jax.random.normal(k8, (16, 32), dtype=jnp.float32), axis=-1)
    loss5 = soft_target_loss(x5, t5)
    jax.block_until_ready(loss5)
    ref5 = _reference(x5.astype(jnp.float32), t5)
    assert jnp.allclose(loss5, ref5, rtol=1e-4, atol=1e-4), (loss5, ref5)

    print("KERNEL_OK")
</pallas_src>

<mosaic_0001>
module attributes {stable_mosaic.version = 11 : i64} {
  func.func @_soft_target_loss_kernel(%arg0: i32, %arg1: i32, %arg2: memref<8x32xf32, #tpu.memory_space<vmem>>, %arg3: memref<8x32xf32, #tpu.memory_space<vmem>>, %arg4: memref<8x1xf32, #tpu.memory_space<vmem>>) attributes {dimension_semantics = [#tpu.dimension_semantics<parallel>, #tpu.dimension_semantics<arbitrary>], iteration_bounds = array<i64: 1, 1>, scalar_prefetch = 0 : i64, scratch_operands = 0 : i64, tpu.core_type = #tpu.core_type<tc>, window_params = [{transform_indices = @transform_0, window_bounds = array<i64: 8, 32>}, {transform_indices = @transform_1, window_bounds = array<i64: 8, 32>}, {transform_indices = @transform_2, window_bounds = array<i64: 8, 1>}]} {
    %c0_i32 = arith.constant 0 : i32
    %0 = arith.cmpi eq, %arg1, %c0_i32 : i32
    %1 = arith.extui %0 : i1 to i32
    %c0_i32_0 = arith.constant 0 : i32
    %2 = arith.cmpi ne, %1, %c0_i32_0 : i32
    scf.if %2 {
      %cst_11 = arith.constant 0.000000e+00 : f32
      %30 = vector.broadcast %cst_11 : f32 to vector<8x1xf32>
      %c0_12 = arith.constant 0 : index
      %c0_13 = arith.constant 0 : index
      %31 = vector.load %arg4[%c0_12, %c0_13] : memref<8x1xf32, #tpu.memory_space<vmem>>, vector<8x1xf32>
      tpu.vector_store %arg4[%c0_12, %c0_13], %30 {strides = array<i32>} : memref<8x1xf32, #tpu.memory_space<vmem>>, vector<8x1xf32>,
    } else {
    }
    %c0 = arith.constant 0 : index
    %c0_1 = arith.constant 0 : index
    %3 = vector.load %arg2[%c0, %c0_1] : memref<8x32xf32, #tpu.memory_space<vmem>>, vector<8x32xf32>
    %c0_2 = arith.constant 0 : index
    %c0_3 = arith.constant 0 : index
    %4 = vector.load %arg3[%c0_2, %c0_3] : memref<8x32xf32, #tpu.memory_space<vmem>>, vector<8x32xf32>
    %cst = arith.constant dense<0xFF800000> : vector<8xf32>
    %5 = vector.multi_reduction <maximumf>, %3, %cst [1] : vector<8x32xf32> to vector<8xf32>
    %6 = vector.shape_cast %5 : vector<8xf32> to vector<8x1xf32>
    %7 = vector.broadcast %6 : vector<8x1xf32> to vector<8x32xf32>
    %8 = arith.subf %3, %7 : vector<8x32xf32>
    %9 = math.exp %8 : vector<8x32xf32>
    %cst_4 = arith.constant dense<0.000000e+00> : vector<8xf32>
    %10 = vector.multi_reduction <add>, %9, %cst_4 [1] : vector<8x32xf32> to vector<8xf32>
    %11 = vector.shape_cast %10 : vector<8xf32> to vector<8x1xf32>
    %12 = math.log %11 : vector<8x1xf32>
    %cst_5 = arith.constant dense<0.000000e+00> : vector<8xf32>
    %13 = vector.multi_reduction <add>, %4, %cst_5 [1] : vector<8x32xf32> to vector<8xf32>
    %14 = vector.shape_cast %13 : vector<8xf32> to vector<8x1xf32>
    %15 = arith.mulf %4, %8 : vector<8x32xf32>
    %cst_6 = arith.constant dense<0.000000e+00> : vector<8xf32>
    %16 = vector.multi_reduction <add>, %15, %cst_6 [1] : vector<8x32xf32> to vector<8xf32>
    %17 = vector.shape_cast %16 : vector<8xf32> to vector<8x1xf32>
    %18 = arith.mulf %12, %14 : vector<8x1xf32>
    %19 = arith.subf %18, %17 : vector<8x1xf32>
    %c1_i32 = arith.constant 1 : i32
    %20 = arith.muli %arg0, %c1_i32 : i32
    %21 = arith.addi %20, %arg1 : i32
    %c8_i32 = arith.constant 8 : i32
    %22 = arith.muli %21, %c8_i32 : i32
    %c8_i32_7 = arith.constant 8 : i32
    %23 = arith.addi %22, %c8_i32_7 : i32
    %c8_i32_8 = arith.constant 8 : i32
    %24 = arith.cmpi sle, %23, %c8_i32_8 : i32
    %25 = arith.extui %24 : i1 to i32
    %c0_i32_9 = arith.constant 0 : i32
    %26 = arith.cmpi ne, %25, %c0_i32_9 : i32
    scf.if %26 {
      %c0_11 = arith.constant 0 : index
      %c0_12 = arith.constant 0 : index
      %30 = vector.load %arg4[%c0_11, %c0_12] : memref<8x1xf32, #tpu.memory_space<vmem>>, vector<8x1xf32>
      %31 = arith.addf %30, %19 : vector<8x1xf32>
      %c0_13 = arith.constant 0 : index
      %c0_14 = arith.constant 0 : index
      %32 = vector.load %arg4[%c0_13, %c0_14] : memref<8x1xf32, #tpu.memory_space<vmem>>, vector<8x1xf32>
      tpu.vector_store %arg4[%c0_13, %c0_14], %31 {strides = array<i32>} : memref<8x1xf32, #tpu.memory_space<vmem>>, vector<8x1xf32>,
    } else {
    }
    %true = arith.constant true
    %27 = arith.xori %24, %true : i1
    %28 = arith.extui %27 : i1 to i32
    %c0_i32_10 = arith.constant 0 : i32
    %29 = arith.cmpi ne, %28, %c0_i32_10 : i32
    scf.if %29 {
      %30 = tpu.iota {dimensions = array<i32: 0>} : vector<8x1xi32>
      %31 = vector.broadcast %22 : i32 to vector<8x1xi32>
      %32 = arith.addi %31, %30 : vector<8x1xi32>
      %c8_i32_11 = arith.constant 8 : i32
      %33 = vector.broadcast %c8_i32_11 : i32 to vector<8x1xi32>
      %34 = arith.cmpi slt, %32, %33 : vector<8x1xi32>
      %c0_12 = arith.constant 0 : index
      %c0_13 = arith.constant 0 : index
      %35 = vector.load %arg4[%c0_12, %c0_13] : memref<8x1xf32, #tpu.memory_space<vmem>>, vector<8x1xf32>
      %cst_14 = arith.constant 0.000000e+00 : f32
      %36 = vector.broadcast %cst_14 : f32 to vector<8x1xf32>
      %37 = arith.select %34, %19, %36 : vector<8x1xi1>, vector<8x1xf32>
      %38 = arith.addf %35, %37 : vector<8x1xf32>
      %c0_15 = arith.constant 0 : index
      %c0_16 = arith.constant 0 : index
      %39 = vector.load %arg4[%c0_15, %c0_16] : memref<8x1xf32, #tpu.memory_space<vmem>>, vector<8x1xf32>
      tpu.vector_store %arg4[%c0_15, %c0_16], %38 {strides = array<i32>} : memref<8x1xf32, #tpu.memory_space<vmem>>, vector<8x1xf32>,
    } else {
    }
    return
  }
  func.func @transform_0(%arg0: i32, %arg1: i32) -> (i32, i32) {
    %c1_i32 = arith.constant 1 : i32
    %0 = arith.muli %arg0, %c1_i32 : i32
    %1 = arith.addi %0, %arg1 : i32
    %c0_i32 = arith.constant 0 : i32
    %2 = arith.minsi %1, %c0_i32 : i32
    %c0_i32_0 = arith.constant 0 : i32
    %c0_i32_1 = arith.constant 0 : i32
    return %2, %c0_i32_0 : i32, i32
  }
  func.func @transform_1(%arg0: i32, %arg1: i32) -> (i32, i32) {
    %c1_i32 = arith.constant 1 : i32
    %0 = arith.muli %arg0, %c1_i32 : i32
    %1 = arith.addi %0, %arg1 : i32
    %c0_i32 = arith.constant 0 : i32
    %2 = arith.minsi %1, %c0_i32 : i32
    %c0_i32_0 = arith.constant 0 : i32
    %c0_i32_1 = arith.constant 0 : i32
    return %2, %c0_i32_0 : i32, i32
  }
  func.func @transform_2(%arg0: i32, %arg1: i32) -> (i32, i32) {
    %c0_i32 = arith.constant 0 : i32
    %c0_i32_0 = arith.constant 0 : i32
    return %arg0, %c0_i32 : i32, i32
  }
}

</mosaic_0001>

<bundles_post_ra>
// kernel: tpu_custom_call.1
= control target key start
LH: loop header
LB: loop body
LE: loop exit
PB: predicated region body
PF: predicated region fallthrough
CT: control target
= control target key end

     0   :  { %7 = vsyncpa [#allocation3], 0  ;;  %s223_s0 = inlined_call_operand.hbm [shape: f32[8,32], index: 0, kind: input, shape index: {}]   ;;  %s224_s1 = inlined_call_operand.hbm [shape: f32[8,32], index: 1, kind: input, shape index: {}]   ;;  %s225_s2 = inlined_call_operand.vmem [shape: f32[8,1], index: 2, kind: output, shape index: {}]  }
   0x1   :  { %8 = vsyncpa [#allocation5], 0  ;;  %s170_s9 = smov [#allocation2]   ;;  %s171_s11 = smov [#allocation4]  }
   0x2   :  { %s20_s10 = sshll.u32 %s170_s9, 4  ;;  %s35_s12 = sshll.u32 %s171_s11, 4  ;;  %s21_s10 = int_to_ptr.vmem [resolvable:$true] %s20_s10  ;;  %s36_s12 = int_to_ptr.vmem [resolvable:$true] %s35_s12 }
   0x3   :  { %s122_s15 = scalar_lea.hbm %s223_s0, 128 }
   0x4   :  { %p123_p0 = scmp.ne.s32.totalorder %s223_s0, %s122_s15  ;;  %p126_p1 = scmp.lt.u32.totalorder %s122_s15, %s223_s0 }
   0x6   :  { %p128_p2 = pnand %p126_p1, %p123_p0 }
   0x8   :  { %131 = shalt.err (!%p128_p2)
}
   0x9   :  { %s132_s20 = scalar_lea.vmem %s21_s10, 128  ;;  %p137_p4 = scmp.lt.s32.totalorder %s21_s10, %s21_s10 }
   0xa   :  { %p133_p3 = scmp.ne.s32.totalorder %s21_s10, %s132_s20  ;;  %p138_p5 = scmp.lt.s32.totalorder %s132_s20, %s132_s20 }
   0xc   :  { %p139_p6 = por %p138_p5, %p137_p4 }
   0xe   :  { %p140_p7 = pnand %p139_p6, %p133_p3 }
  0x10   :  { %143 = shalt.err (!%p140_p7)
}
  0x11   :  { %23 = dma.hbm_to_vmem [thread:$0]  %s223_s0, 128, %s21_s10, [#allocation3]  }
  0x12   :  { %s144_s25 = scalar_lea.hbm %s224_s1, 128 }
  0x13   :  { %p145_p8 = scmp.ne.s32.totalorder %s224_s1, %s144_s25  ;;  %p148_p9 = scmp.lt.u32.totalorder %s144_s25, %s224_s1 }
  0x15   :  { %p150_p10 = pnand %p148_p9, %p145_p8 }
  0x17   :  { %153 = shalt.err (!%p150_p10)
}
  0x18   :  { %s154_s30 = scalar_lea.vmem %s36_s12, 128  ;;  %p159_p12 = scmp.lt.s32.totalorder %s36_s12, %s36_s12 }
  0x19   :  { %p155_p11 = scmp.ne.s32.totalorder %s36_s12, %s154_s30  ;;  %p160_p13 = scmp.lt.s32.totalorder %s154_s30, %s154_s30 }
  0x1b   :  { %p161_p0 = por %p160_p13, %p159_p12 }
  0x1d   :  { %p162_p1 = pnand %p161_p0, %p155_p11 }
  0x1f   :  { %165 = shalt.err (!%p162_p1)
}
  0x20   :  { %38 = dma.hbm_to_vmem [thread:$0]  %s224_s1, 128, %s36_s12, [#allocation5]  }
  0x21   :  { %166 = dma.done.wait [#allocation3], 128  }
  0x22   :  { %167 = vsyncadd [#allocation3], 4294967168 }
  0x23   :  { %168 = dma.done.wait [#allocation5], 128  }
  0x24   :  { %169 = vsyncadd [#allocation5], 4294967168  ;;  %vm55_vm0 = vcmask 7168   ;;  %v172_v0 = vmov 0.0   ;;  %vm59_vm1 = vcmask 261120   ;;  %v57_v1 = vld [vmem:[#allocation2] sm:$0xff] }
  0x25   :  { %56 = vst.msk [vmem:[%s225_s2] sm:$0xff] %vm55_vm0, %v172_v0  ;;  %v60_v2 = vsel %vm59_vm1, %v57_v1, -inf  ;;  %v58_v3 = vld [vmem:[#allocation4] sm:$0xff] }
  0x26   :  { %61 = vmax.xlane.f32.xlu0 %v60_v2  ;;  %v71_v4 = vsel %vm59_vm1, %v58_v3, 0.0 }
  0x27   :  { %72 = vadd.xlane.f32.xlu1 %v71_v4 }
  0x2c   :  { %v87_v18 = vld [vmem:[%s225_s2] sm:$0xff] }
  0xb3   :  { %v62_v5 = vpop.xlane.xlu0 %61 }
  0xb4   :  { %v63_v6 = vsub.f32 %v57_v1, %v62_v5  ;;  %v73_v13 = vpop.xlane.xlu1 %72 }
  0xb6   :  { %v64_v7 = vmul.f32 1.442695, %v63_v6  ;;  %v74_v8 = vmul.f32 %v63_v6, %v58_v3 }
  0xb8   :  { %118 = vpow2.f32 %v64_v7  ;;  %v75_v9 = vsel %vm59_vm1, %v74_v8, 0.0 }
  0xb9   :  { %76 = vadd.xlane.f32.xlu1 %v75_v9 }
  0xc2   :  { %v119_v10 = vpop.eup %118 }
  0xc3   :  { %v66_v11 = vsel %vm59_vm1, %v119_v10, 0.0 }
  0xc4   :  { %67 = vadd.xlane.f32.xlu0 %v66_v11 }
 0x146   :  { %v77_v17 = vpop.xlane.xlu1 %76 }
 0x151   :  { %v68_v12 = vpop.xlane.xlu0 %67 }
 0x152   :  { %120 = vlog2.f32 %v68_v12 }
 0x15c   :  { %v121_v14 = vpop.eup %120 }
 0x15d   :  { %v70_v15 = vmul.f32 0.6931472, %v121_v14 }
 0x15f   :  { %v78_v16 = vmul.f32 %v73_v13, %v70_v15 }
 0x161   :  { %v79_v19 = vsub.f32 %v78_v16, %v77_v17 }
 0x163   :  { %v88_v20 = vadd.f32 %v87_v18, %v79_v19 }
 0x165   :  { %90 = vst.msk [vmem:[%s225_s2] sm:$0xff] %vm55_vm0, %v88_v20 }
 0x166   :  { %109 = vsyncpa [#allocation3], 1 }
 0x167   :  { %110 = vsyncpa [#allocation5], 1 }

</bundles_post_ra>
